<compile_context>
chip_gen: v7x
topology: tpu7x:2x2x1
jax: 0.10.0
libtpu: 0.0.40
codegen_flags: <defaults>
</compile_context>

<pallas_src>
import jax
import jax.numpy as jnp
from jax.experimental import pallas as pl
from jax.experimental.pallas import tpu as pltpu

# --------------------------------------------------------------------------
# Model hyperparameters (small, consistent with the module's __init__)
# --------------------------------------------------------------------------
BATCH      = 8     # batch size
INPUT_DIM  = 32    # net_args['sizes'][0]
HIDDEN_DIM = 64    # hidden layer of the MLP
OUTPUT_DIM = 32    # net_args['sizes'][-1]
OBS_DIM    = 16    # observation_space.shape[0]
N_ACTIONS  = 4     # Discrete(action_space.n)

LANES       = 128              # lane-dense output width
LANE_REWARD = OBS_DIM          # 16
LANE_DONE   = OBS_DIM + 1      # 17

# Single bf16 parameter slab; every block starts at a multiple of 16 rows
# (bf16 sublane tile) so all in-kernel slices are tile-aligned full-lane views.
EMB_ROWS = 16                          # rows allocated for (E @ W1); 4 valid
R_EMBW1  = 0                           # 16 rows : E @ W1        (4 x 64 valid)
R_W1     = R_EMBW1 + EMB_ROWS          # 16      : W1            (32 x 64 valid)
R_W2     = R_W1 + INPUT_DIM            # 48      : W2            (64 x 32 valid)
R_WH     = R_W2 + HIDDEN_DIM           # 112     : [ws|wr|wd]    (32 x 18 valid)
R_B      = R_WH + OUTPUT_DIM           # 144     : bias block    (3 rows valid)
W_ROWS   = R_B + 16                    # 160 rows total (~40 KiB in bf16)
ROW_B1, ROW_B2, ROW_BH = 0, 1, 2       # rows inside the bias block

_VMEM = pl.BlockSpec(memory_space=pltpu.MemorySpace.VMEM)


# --------------------------------------------------------------------------
# Shared in-kernel forward: returns the fused head slab (B, 128) in f32
#   lanes 0..15 = state_head, lane 16 = reward_head, lane 17 = done_head logit,
#   lanes 18..127 = 0 (zero-padded weights/biases guarantee exact zeros)
# --------------------------------------------------------------------------
def _mlp_heads(s_ref, a_ref, w_ref):
    B = s_ref.shape[0]
    f32, bf16 = jnp.float32, jnp.bfloat16

    # one-hot action (B, 16); columns >= N_ACTIONS never match and the
    # corresponding embW1 rows are zero anyway.
    onehot = (jax.lax.broadcasted_iota(jnp.int32, (B, EMB_ROWS), 1)
              == a_ref[...]).astype(bf16)

    w_embw1 = w_ref[R_EMBW1:R_EMBW1 + EMB_ROWS, :]      # (16, 128)  E @ W1
    w1      = w_ref[R_W1:R_W1 + INPUT_DIM, :]           # (32, 128)  W1
    w2      = w_ref[R_W2:R_W2 + HIDDEN_DIM, :]          # (64, 128)  W2
    wh      = w_ref[R_WH:R_WH + OUTPUT_DIM, :]          # (32, 128)  [ws|wr|wd]
    bias    = w_ref[R_B:R_B + 16, :].astype(f32)        # (16, 128)  bias block
    b1 = bias[ROW_B1:ROW_B1 + 1, :]                     # (1, 128)
    b2 = bias[ROW_B2:ROW_B2 + 1, :]
    bh = bias[ROW_BH:ROW_BH + 1, :]

    # (s + E[a]) @ W1 + b1  ==  s @ W1 + onehot @ (E @ W1) + b1   (exact by linearity)
    # MXU operands in bf16, f32 accumulation; elementwise math stays f32.
    h = (jnp.dot(s_ref[...].astype(bf16), w1, preferred_element_type=f32)
         + jnp.dot(onehot, w_embw1, preferred_element_type=f32)
         + b1)
    h = jnp.maximum(h, 0.0)                                               # ReLU
    e = jnp.dot(h[:, :HIDDEN_DIM].astype(bf16), w2,
                preferred_element_type=f32) + b2                          # (B,128)
    heads = jnp.dot(e[:, :OUTPUT_DIM].astype(bf16), wh,
                    preferred_element_type=f32) + bh                      # (B,128)
    return heads


# --------------------------------------------------------------------------
# Kernel 1: inference path (r is None)
#   state/reward from the head slab; done ~ Bernoulli(sigmoid(done_logit)),
#   sampled by comparing a wrapper-supplied uniform against the in-kernel
#   sigmoid.  Output (B, 128): lanes 0..15 state, 16 reward, 17 done (0/1 f32).
# --------------------------------------------------------------------------
def _infer_kernel(s_ref, a_ref, u_ref, w_ref, out_ref):
    B = out_ref.shape[0]
    heads = _mlp_heads(s_ref, a_ref, w_ref)

    # sigmoid over the whole vreg (only lane 17 matters; same cost per vreg).
    p = 1.0 / (1.0 + jnp.exp(-heads))
    done = (u_ref[...] < p).astype(jnp.float32)          # (B,1) < (B,128) -> (B,128)

    lane = jax.lax.broadcasted_iota(jnp.int32, (B, LANES), 1)
    out_ref[...] = jnp.where(lane == LANE_DONE, done, heads)


# --------------------------------------------------------------------------
# Kernel 2: training path — forward + per-example combined loss, one kernel.
#   loss = mean_j (state - s1)^2 + (reward - r)^2 + 10 * BCEWithLogits(done, d)
#   Output (B, 128): loss broadcast across lanes (lane-dense store);
#   wrapper reads lane 0.
# --------------------------------------------------------------------------
def _train_kernel(s_ref, a_ref, s1_ref, r_ref, d_ref, w_ref, out_ref):
    B = out_ref.shape[0]
    heads = _mlp_heads(s_ref, a_ref, w_ref)
    lane = jax.lax.broadcasted_iota(jnp.int32, (B, LANES), 1)

    # state MSE over the 16 observation lanes (single cross-lane reduce)
    ds = heads[:, :OBS_DIM] - s1_ref[...]
    state_loss = jnp.sum(ds * ds, axis=1, keepdims=True) * (1.0 / OBS_DIM)

    # reward MSE + 10 * BCE-with-logits(done), fused into ONE masked reduce.
    # numerically-stable BCE: max(x,0) - x*d + log(1 + exp(-|x|))
    # (log(1+t) instead of log1p(t) for guaranteed lowering; delta < 1e-6.)
    r_b = r_ref[...]                                      # (B, 1), broadcasts
    d_b = d_ref[...]
    sq_r = (heads - r_b) ** 2
    bce = (jnp.maximum(heads, 0.0) - heads * d_b
           + jnp.log(1.0 + jnp.exp(-jnp.abs(heads))))
    contrib = jnp.where(lane == LANE_REWARD, sq_r,
                        jnp.where(lane == LANE_DONE, 10.0 * bce, 0.0))
    rd_loss = jnp.sum(contrib, axis=1, keepdims=True)

    loss = state_loss + rd_loss                           # (B, 1)
    out_ref[...] = jnp.broadcast_to(loss, (B, LANES))


# --------------------------------------------------------------------------
# Parameter init (torch-like: Linear ~ U(-1/sqrt(fan_in), ...), Embedding ~ N(0,1))
# and packing into the single bf16 kernel slab.
# --------------------------------------------------------------------------
def init_raw_params(key):
    ks = jax.random.split(key, 6)

    def linear(k, fan_in, fan_out):
        kw, kb = jax.random.split(k)
        bound = 1.0 / jnp.sqrt(jnp.float32(fan_in))
        w = jax.random.uniform(kw, (fan_in, fan_out), jnp.float32, -bound, bound)
        b = jax.random.uniform(kb, (1, fan_out), jnp.float32, -bound, bound)
        return w, b

    emb = jax.random.normal(ks[0], (N_ACTIONS, INPUT_DIM), jnp.float32)
    w1, b1 = linear(ks[1], INPUT_DIM, HIDDEN_DIM)
    w2, b2 = linear(ks[2], HIDDEN_DIM, OUTPUT_DIM)
    ws, bs = linear(ks[3], OUTPUT_DIM, OBS_DIM)
    wr, br = linear(ks[4], OUTPUT_DIM, 1)
    wd, bd = linear(ks[5], OUTPUT_DIM, 1)
    return dict(emb=emb, w1=w1, b1=b1, w2=w2, b2=b2,
                ws=ws, bs=bs, wr=wr, br=br, wd=wd, bd=bd)


def pack_params(raw):
    """Pack every parameter into one zero-padded bf16 slab (160, 128)."""
    P = jax.lax.Precision.HIGHEST
    emb_w1 = jnp.dot(raw["emb"], raw["w1"], precision=P)          # (4, 64)

    w = jnp.zeros((W_ROWS, LANES), jnp.float32)
    w = w.at[R_EMBW1:R_EMBW1 + N_ACTIONS, :HIDDEN_DIM].set(emb_w1)
    w = w.at[R_W1:R_W1 + INPUT_DIM, :HIDDEN_DIM].set(raw["w1"])
    w = w.at[R_W2:R_W2 + HIDDEN_DIM, :OUTPUT_DIM].set(raw["w2"])
    w = w.at[R_WH:R_WH + OUTPUT_DIM, :OBS_DIM].set(raw["ws"])
    w = w.at[R_WH:R_WH + OUTPUT_DIM, LANE_REWARD].set(raw["wr"][:, 0])
    w = w.at[R_WH:R_WH + OUTPUT_DIM, LANE_DONE].set(raw["wd"][:, 0])
    w = w.at[R_B + ROW_B1, :HIDDEN_DIM].set(raw["b1"][0])
    w = w.at[R_B + ROW_B2, :OUTPUT_DIM].set(raw["b2"][0])
    w = w.at[R_B + ROW_BH, :OBS_DIM].set(raw["bs"][0])
    w = w.at[R_B + ROW_BH, LANE_REWARD].set(raw["br"][0, 0])
    w = w.at[R_B + ROW_BH, LANE_DONE].set(raw["bd"][0, 0])
    return dict(wslab=w.astype(jnp.bfloat16))


# --------------------------------------------------------------------------
# Forward wrappers matching ParameterizedModel.forward
# --------------------------------------------------------------------------
@jax.jit
def forward_infer(params, s, a, key):
    """r is None branch: returns (reward, state, done). `key` must be fresh per call."""
    B = s.shape[0]
    a2d = a.reshape(-1, 1).astype(jnp.int32)
    # Bernoulli uniform generated here (portable); compared in-kernel.
    # TODO(synk): not bit-reproducible with torch.Categorical (distributionally equal).
    u = jax.random.uniform(key, (B, 1), jnp.float32)
    out = pl.pallas_call(
        _infer_kernel,
        out_shape=jax.ShapeDtypeStruct((B, LANES), jnp.float32),
        in_specs=[_VMEM, _VMEM, _VMEM, _VMEM],
        out_specs=_VMEM,
    )(s, a2d, u, params["wslab"])
    reward = out[:, LANE_REWARD]
    state = out[:, :OBS_DIM]
    done = out[:, LANE_DONE].astype(jnp.int32)
    return reward, state, done


@jax.jit
def forward_train(params, s, a, r, s1, d):
    """Training branch: returns per-example combined loss."""
    B = s.shape[0]
    a2d = a.reshape(-1, 1).astype(jnp.int32)
    out = pl.pallas_call(
        _train_kernel,
        out_shape=jax.ShapeDtypeStruct((B, LANES), jnp.float32),
        in_specs=[_VMEM] * 6,
        out_specs=_VMEM,
    )(s, a2d, s1, r.reshape(-1, 1), d.reshape(-1, 1), params["wslab"])
    return out[:, 0]


# --------------------------------------------------------------------------
# Pure-JAX f32 reference (loose numerical sanity check; kernel uses bf16 MXU operands)
# --------------------------------------------------------------------------
def _reference_heads(raw, s, a):
    P = jax.lax.Precision.HIGHEST
    x = s + raw["emb"][a]
    h = jnp.maximum(jnp.dot(x, raw["w1"], precision=P) + raw["b1"], 0.0)
    e = jnp.dot(h, raw["w2"], precision=P) + raw["b2"]
    state = jnp.dot(e, raw["ws"], precision=P) + raw["bs"]
    reward = (jnp.dot(e, raw["wr"], precision=P) + raw["br"])[:, 0]
    dlogit = (jnp.dot(e, raw["wd"], precision=P) + raw["bd"])[:, 0]
    return state, reward, dlogit


def _reference_loss(raw, s, a, r, s1, d):
    state, reward, dlogit = _reference_heads(raw, s, a)
    state_loss = jnp.mean((state - s1) ** 2, axis=1)
    reward_loss = (reward - r) ** 2
    done_loss = (jnp.maximum(dlogit, 0.0) - dlogit * d
                 + jnp.log(1.0 + jnp.exp(-jnp.abs(dlogit))))
    return state_loss + reward_loss + 10.0 * done_loss


# --------------------------------------------------------------------------
if __name__ == "__main__":
    key = jax.random.PRNGKey(0)
    k_param, k_s, k_a, k_r, k_s1, k_d, k_step = jax.random.split(key, 7)

    raw = init_raw_params(k_param)
    params = pack_params(raw)

    s  = jax.random.normal(k_s, (BATCH, INPUT_DIM), jnp.float32)
    a  = jax.random.randint(k_a, (BATCH,), 0, N_ACTIONS, jnp.int32)
    r  = jax.random.normal(k_r, (BATCH,), jnp.float32)
    s1 = jax.random.normal(k_s1, (BATCH, OBS_DIM), jnp.float32)
    d  = (jax.random.uniform(k_d, (BATCH,)) > 0.5).astype(jnp.float32)

    # inference branch (r is None)
    reward_pred, state_pred, done_pred = forward_infer(params, s, a, k_step)
    jax.block_until_ready((reward_pred, state_pred, done_pred))
    assert reward_pred.shape == (BATCH,)
    assert state_pred.shape == (BATCH, OBS_DIM)
    assert done_pred.shape == (BATCH,)
    assert bool(jnp.all((done_pred == 0) | (done_pred == 1)))

    # training branch (per-example combined loss)
    loss = forward_train(params, s, a, r, s1, d)
    jax.block_until_ready(loss)
    assert loss.shape == (BATCH,)
    assert bool(jnp.all(jnp.isfinite(loss)))

    # loose numerical check vs the f32 reference (kernel uses bf16 MXU operands)
    state_ref, reward_ref, _ = _reference_heads(raw, s, a)
    loss_ref = _reference_loss(raw, s, a, r, s1, d)
    assert bool(jnp.allclose(state_pred, state_ref, rtol=5e-2, atol=1e-1))
    assert bool(jnp.allclose(reward_pred, reward_ref, rtol=5e-2, atol=1e-1))
    assert bool(jnp.allclose(loss, loss_ref, rtol=5e-2, atol=1e-1))

    print("KERNEL_OK")
</pallas_src>

<mosaic_0001>
module attributes {stable_mosaic.version = 11 : i64} {
  func.func @_infer_kernel(%arg0: memref<8x32xf32, #tpu.memory_space<vmem>>, %arg1: memref<8x1xi32, #tpu.memory_space<vmem>>, %arg2: memref<8x1xf32, #tpu.memory_space<vmem>>, %arg3: memref<160x128xbf16, #tpu.memory_space<vmem>>, %arg4: memref<8x128xf32, #tpu.memory_space<vmem>>) attributes {dimension_semantics = [], scalar_prefetch = 0 : i64, scratch_operands = 0 : i64, tpu.core_type = #tpu.core_type<tc>} {
    %0 = tpu.iota {dimensions = array<i32: 1>} : vector<8x16xi32>
    %c0 = arith.constant 0 : index
    %c0_0 = arith.constant 0 : index
    %1 = vector.load %arg1[%c0, %c0_0] : memref<8x1xi32, #tpu.memory_space<vmem>>, vector<8x1xi32>
    %2 = vector.broadcast %1 : vector<8x1xi32> to vector<8x16xi32>
    %3 = arith.cmpi eq, %0, %2 : vector<8x16xi32>
    %4 = arith.extui %3 : vector<8x16xi1> to vector<8x16xi32>
    %5 = arith.sitofp %4 : vector<8x16xi32> to vector<8x16xf32>
    %6 = arith.truncf %5 : vector<8x16xf32> to vector<8x16xbf16>
    %c0_1 = arith.constant 0 : index
    %c0_2 = arith.constant 0 : index
    %7 = vector.load %arg3[%c0_1, %c0_2] : memref<160x128xbf16, #tpu.memory_space<vmem>>, vector<16x128xbf16>
    %c16 = arith.constant 16 : index
    %c0_3 = arith.constant 0 : index
    %8 = vector.load %arg3[%c16, %c0_3] : memref<160x128xbf16, #tpu.memory_space<vmem>>, vector<32x128xbf16>
    %c48 = arith.constant 48 : index
    %c0_4 = arith.constant 0 : index
    %9 = vector.load %arg3[%c48, %c0_4] : memref<160x128xbf16, #tpu.memory_space<vmem>>, vector<64x128xbf16>
    %c112 = arith.constant 112 : index
    %c0_5 = arith.constant 0 : index
    %10 = vector.load %arg3[%c112, %c0_5] : memref<160x128xbf16, #tpu.memory_space<vmem>>, vector<32x128xbf16>
    %c144 = arith.constant 144 : index
    %c0_6 = arith.constant 0 : index
    %11 = vector.load %arg3[%c144, %c0_6] : memref<160x128xbf16, #tpu.memory_space<vmem>>, vector<16x128xbf16>
    %12 = arith.extf %11 : vector<16x128xbf16> to vector<16x128xf32>
    %13 = vector.extract_strided_slice %12 {offsets = [0, 0], sizes = [1, 128], strides = [1, 1]} : vector<16x128xf32> to vector<1x128xf32>
    %14 = vector.extract_strided_slice %12 {offsets = [1, 0], sizes = [1, 128], strides = [1, 1]} : vector<16x128xf32> to vector<1x128xf32>
    %15 = vector.extract_strided_slice %12 {offsets = [2, 0], sizes = [1, 128], strides = [1, 1]} : vector<16x128xf32> to vector<1x128xf32>
    %c0_7 = arith.constant 0 : index
    %c0_8 = arith.constant 0 : index
    %16 = vector.load %arg0[%c0_7, %c0_8] : memref<8x32xf32, #tpu.memory_space<vmem>>, vector<8x32xf32>
    %17 = arith.truncf %16 : vector<8x32xf32> to vector<8x32xbf16>
    %cst = arith.constant dense<0.000000e+00> : vector<8x128xf32>
    %18 = tpu.matmul %17, %8, %cst {dimension_numbers = #tpu.dot_dimension_numbers<[1], [0], [0], [1], [0, 0, 1, 1], [], []>} : vector<8x32xbf16>, vector<32x128xbf16>, vector<8x128xf32> -> vector<8x128xf32>
    %cst_9 = arith.constant dense<0.000000e+00> : vector<8x128xf32>
    %19 = tpu.matmul %6, %7, %cst_9 {dimension_numbers = #tpu.dot_dimension_numbers<[1], [0], [0], [1], [0, 0, 1, 1], [], []>} : vector<8x16xbf16>, vector<16x128xbf16>, vector<8x128xf32> -> vector<8x128xf32>
    %20 = arith.addf %18, %19 : vector<8x128xf32>
    %21 = vector.broadcast %13 : vector<1x128xf32> to vector<8x128xf32>
    %22 = arith.addf %20, %21 : vector<8x128xf32>
    %cst_10 = arith.constant 0.000000e+00 : f32
    %23 = vector.broadcast %cst_10 : f32 to vector<8x128xf32>
    %24 = arith.maximumf %22, %23 : vector<8x128xf32>
    %25 = vector.extract_strided_slice %24 {offsets = [0, 0], sizes = [8, 64], strides = [1, 1]} : vector<8x128xf32> to vector<8x64xf32>
    %26 = arith.truncf %25 : vector<8x64xf32> to vector<8x64xbf16>
    %cst_11 = arith.constant dense<0.000000e+00> : vector<8x128xf32>
    %27 = tpu.matmul %26, %9, %cst_11 {dimension_numbers = #tpu.dot_dimension_numbers<[1], [0], [0], [1], [0, 0, 1, 1], [], []>} : vector<8x64xbf16>, vector<64x128xbf16>, vector<8x128xf32> -> vector<8x128xf32>
    %28 = vector.broadcast %14 : vector<1x128xf32> to vector<8x128xf32>
    %29 = arith.addf %27, %28 : vector<8x128xf32>
    %30 = vector.extract_strided_slice %29 {offsets = [0, 0], sizes = [8, 32], strides = [1, 1]} : vector<8x128xf32> to vector<8x32xf32>
    %31 = arith.truncf %30 : vector<8x32xf32> to vector<8x32xbf16>
    %cst_12 = arith.constant dense<0.000000e+00> : vector<8x128xf32>
    %32 = tpu.matmul %31, %10, %cst_12 {dimension_numbers = #tpu.dot_dimension_numbers<[1], [0], [0], [1], [0, 0, 1, 1], [], []>} : vector<8x32xbf16>, vector<32x128xbf16>, vector<8x128xf32> -> vector<8x128xf32>
    %33 = vector.broadcast %15 : vector<1x128xf32> to vector<8x128xf32>
    %34 = arith.addf %32, %33 : vector<8x128xf32>
    %cst_13 = arith.constant 0.000000e+00 : f32
    %35 = vector.broadcast %cst_13 : f32 to vector<8x128xf32>
    %36 = arith.subf %35, %34 : vector<8x128xf32>
    %37 = math.exp %36 : vector<8x128xf32>
    %cst_14 = arith.constant 1.000000e+00 : f32
    %38 = vector.broadcast %cst_14 : f32 to vector<8x128xf32>
    %39 = arith.addf %38, %37 : vector<8x128xf32>
    %cst_15 = arith.constant 1.000000e+00 : f32
    %40 = vector.broadcast %cst_15 : f32 to vector<8x128xf32>
    %41 = arith.divf %40, %39 : vector<8x128xf32>
    %c0_16 = arith.constant 0 : index
    %c0_17 = arith.constant 0 : index
    %42 = vector.load %arg2[%c0_16, %c0_17] : memref<8x1xf32, #tpu.memory_space<vmem>>, vector<8x1xf32>
    %43 = vector.broadcast %42 : vector<8x1xf32> to vector<8x128xf32>
    %44 = arith.cmpf olt, %43, %41 : vector<8x128xf32>
    %45 = arith.extui %44 : vector<8x128xi1> to vector<8x128xi32>
    %46 = arith.sitofp %45 : vector<8x128xi32> to vector<8x128xf32>
    %47 = tpu.iota {dimensions = array<i32: 1>} : vector<8x128xi32>
    %c17_i32 = arith.constant 17 : i32
    %48 = vector.broadcast %c17_i32 : i32 to vector<8x128xi32>
    %49 = arith.cmpi eq, %47, %48 : vector<8x128xi32>
    %50 = arith.select %49, %46, %34 : vector<8x128xi1>, vector<8x128xf32>
    %c0_18 = arith.constant 0 : index
    %c0_19 = arith.constant 0 : index
    %51 = vector.load %arg4[%c0_18, %c0_19] : memref<8x128xf32, #tpu.memory_space<vmem>>, vector<8x128xf32>
    tpu.vector_store %arg4[%c0_18, %c0_19], %50 {strides = array<i32>} : memref<8x128xf32, #tpu.memory_space<vmem>>, vector<8x128xf32>,
    return
  }
}

</mosaic_0001>

<bundles_post_ra>
// kernel: forward_infer.1
= control target key start
LH: loop header
LB: loop body
LE: loop exit
PB: predicated region body
PF: predicated region fallthrough
CT: control target
= control target key end

     0   :  { %9 = vsyncpa [#allocation3], 0  ;;  %s438_s15 = smov [#allocation2]   ;;  %s518_s0 = inlined_call_operand.vmem [shape: f32[8,32], index: 0, kind: input, shape index: {}]   ;;  %s519_s1 = inlined_call_operand.vmem [shape: s32[8,1], index: 1, kind: input, shape index: {}]   ;;  %s520_s2 = inlined_call_operand.vmem [shape: f32[8,1], index: 2, kind: input, shape index: {}]   ;;  %s521_s3 = inlined_call_operand.hbm [shape: bf16[160,128], index: 3, kind: input, shape index: {}]   ;;  %s522_s4 = inlined_call_operand.vmem [shape: f32[8,128], index: 4, kind: output, shape index: {}]  }
   0x1   :  { %s21_s16 = sshll.u32 %s438_s15, 4  ;;  %s414_s19 = scalar_lea.hbm %s521_s3, 1280  ;;  %s22_s16 = int_to_ptr.vmem [resolvable:$true] %s21_s16 }
   0x2   :  { %p415_p0 = scmp.ne.s32.totalorder %s521_s3, %s414_s19  ;;  %p418_p1 = scmp.lt.u32.totalorder %s414_s19, %s521_s3 }
   0x4   :  { %p420_p2 = pnand %p418_p1, %p415_p0 }
   0x6   :  { %423 = shalt.err (!%p420_p2)
}
   0x7   :  { %s424_s24 = scalar_lea.vmem %s22_s16, 1280  ;;  %p429_p4 = scmp.lt.s32.totalorder %s22_s16, %s22_s16 }
   0x8   :  { %p425_p3 = scmp.ne.s32.totalorder %s22_s16, %s424_s24  ;;  %p430_p5 = scmp.lt.s32.totalorder %s424_s24, %s424_s24 }
   0xa   :  { %p431_p6 = por %p430_p5, %p429_p4 }
   0xc   :  { %p432_p7 = pnand %p431_p6, %p425_p3 }
   0xe   :  { %435 = shalt.err (!%p432_p7)
}
   0xf   :  { %s439_s25 = smov 64   ;;  %s440_s26 = smov 4  }
  0x10   :  { %27 = dma.hbm_to_vmem [thread:$0]  %s521_s3, 1280, %s22_s16, [#allocation3], %s439_s25, %s439_s25, %s440_s26  }
  0x11   :  { %436 = dma.done.wait [#allocation3], 1280  }
  0x12   :  { %437 = vsyncadd [#allocation3], 4294966016  ;;  %v441_v0 = vmov 0   ;;  %v442_v1 = vmov 0.0   ;;  %v34_v2 = vld [vmem:[%s519_s1] sm:$0xff]  ;;  %v401_v4 = vld [vmem:[#allocation2 + $0x8] sm:$0xff]   ;;  %v32_v9 = vlaneseq }
  0x13   :  { %400 = vset.pattern.permute.xlu0 %v441_v0  ;;  %366 = vmatprep.subr.bf16.mxu1 %v442_v1  ;;  %v315_v3 = vld [vmem:[%s520_s2] sm:$0xff]  ;;  %vm443_vm0 = vmmov 0   ;;  %v402_v5 = vld [vmem:[#allocation2 + $0x10] sm:$0xff]   ;;  %vm126_vm1 = vcmask 261120   ;;  %vm70_vm3 = vcmask 130048   ;;  %v404_v13 = vld [vmem:[#allocation2 + $0x18] sm:$0xff]  }
  0x14   :  { %360 = vmatprep.subr.bf16.mxu0 %v442_v1  ;;  %36 = vperm.xlu0 %400, %v34_v2   ;;  %v403_v6 = vld [vmem:[#allocation2] sm:$0xff]   ;;  %v502_v10 = vand.u32 127, %v32_v9  ;;  %v406_v16 = vld [vmem:[#allocation2 + $0x28] sm:$0xff]   ;;  %v407_v17 = vld [vmem:[#allocation2 + $0x30] sm:$0xff]   ;;  %v171_v23 = vshrl.u32 %v32_v9, 7  ;;  %vm205_vm4 = vcmask 523264  }
  0x15   :  { %370 = vmatprep.mubr.msk.bf16.mxu1 %vm443_vm0, %v442_v1  ;;  %362 = vmatprep.mubr.msk.bf16.mxu0 %vm443_vm0, %v442_v1  ;;  %v62_v7 = vld [vmem:[%s518_s0] sm:$0xff]  ;;  %v408_v22 = vld [vmem:[#allocation2 + $0x38] sm:$0xff]   ;;  %v60_v24 = vld [vmem:[#allocation2 + $0x48] sm:$0xf] }
  0x16   :  { %367 = vmatpush3.bf16.msra.mxu1 %v401_v4  ;;  %361 = vmatpush3.bf16.msra.mxu0 %v403_v6  ;;  %v63_v8 = vpack.c.bf16 %v62_v7, %v62_v7  ;;  %v405_v15 = vld [vmem:[#allocation2 + $0x20] sm:$0xff]   ;;  %v61_v25 = vunpack.c.l.bf16 %v60_v24  ;;  %v172_v26 = vsub.s32 0, %v171_v23  ;;  %v179_v37 = vsub.s32 1, %v171_v23 }
  0x17   :  { %368 = vmatprep.subr.bf16.mxu1 %v442_v1  ;;  %374 = vmatprep.subr.bf16.mxu0 %v442_v1  ;;  %v409_v36 = vld [vmem:[#allocation2 + $0x40] sm:$0xff]   ;;  %v252_v45 = vsub.s32 2, %v171_v23  ;;  %vm324_vm5 = vcmp.eq.s32.totalorder %v502_v10, 17 }
  0x18   :  { %318 = vperm.xlu0 %400, %v315_v3   ;;  %v173_v27 = vrot.slane %v61_v25, %v172_v26  ;;  %v180_v38 = vrot.slane %v61_v25, %v179_v37 }
  0x19   :  { %v253_v46 = vrot.slane %v61_v25, %v252_v45 }
  0x1a   :  { %369 = vmatpush3.bf16.msra.mxu1 %v402_v5 }
  0x1b   :  { %386 = vmatprep.subr.bf16.mxu1 %v442_v1 }
  0x1d   :  { %371 = vmatmul.mubr.msk.bf16.vlgmr.msra.gmra.mrb[0].mxu1 %vm126_vm1, %v63_v8 }
  0x1e   :  { %390 = vmatprep.mubr.msk.bf16.mxu1 %vm443_vm0, %v442_v1  ;;  %387 = vmatpush3.bf16.msra.mxu1 %v408_v22 }
  0x1f   :  { %388 = vmatprep.subr.bf16.mxu1 %v442_v1 }
  0x22   :  { %389 = vmatpush3.bf16.msra.mxu1 %v409_v36 }
  0x93   :  { %v37_v11 = vpop.permute.xlu0 %36 }
  0x94   :  { %vm38_vm2 = vcmp.eq.s32.totalorder %v502_v10, %v37_v11 }
  0x95   :  { %v332_v12 = vsel %vm38_vm2, 1.0, %v442_v1 }
  0x96   :  { %v41_v14 = vpack.c.bf16 %v332_v12, %v332_v12 }
  0x97   :  { %v319_v57 = vpop.permute.xlu0 %318 }
  0x98   :  { %363 = vmatmul.mubr.msk.bf16.vlgmr.msra.gmra.mrb[0].mxu0 %vm70_vm3, %v41_v14 }
  0x99   :  { %375 = vmatpush3.bf16.msra.mxu0 %v404_v13  ;;  %382 = vmatprep.mubr.msk.bf16.mxu0 %vm443_vm0, %v442_v1 }
  0x9a   :  { %376 = vmatprep.subr.bf16.mxu0 %v442_v1 }
  0x9d   :  { %377 = vmatpush3.bf16.msra.mxu0 %v405_v15 }
  0x9e   :  { %378 = vmatprep.subr.bf16.mxu0 %v442_v1 }
  0xa1   :  { %379 = vmatpush3.bf16.msra.mxu0 %v406_v16 }
  0xa2   :  { %380 = vmatprep.subr.bf16.mxu0 %v442_v1 }
  0xa5   :  { %381 = vmatpush3.bf16.msra.mxu0 %v407_v17 }
  0xf0   :  { %v164_v18 = vpop.f32.mrb[0].mxu1 }
  0xf1   :  { %v372_v19 = vpop.f32.mrb[1].mxu1 }
  0xf2   :  { %v167_v20 = vpop.f32.mrb[2].mxu1 }
  0xf3   :  { %v373_v21 = vpop.f32.mrb[3].mxu1 }
 0x16b   :  { %v108_v28 = vpop.f32.mrb[0].mxu0 }
 0x16c   :  { %v165_v29 = vadd.f32 %v164_v18, %v108_v28  ;;  %v364_v30 = vpop.f32.mrb[1].mxu0 }
 0x16d   :  { %v111_v31 = vpop.f32.mrb[2].mxu0 }
 0x16e   :  { %v174_v32 = vadd.f32 %v173_v27, %v165_v29  ;;  %v365_v33 = vpop.f32.mrb[3].mxu0 }
 0x170   :  { %v175_v34 = vmax.f32 %v174_v32, 0.0 }
 0x172   :  { %v176_v35 = vpack.c.bf16 %v175_v34, %v175_v34 }
 0x174   :  { %383 = vmatmul.mubr.msk.bf16.vlgmr.msra.gmra.mrb[4].mxu0 %vm205_vm4, %v176_v35 }
 0x247   :  { %v243_v39 = vpop.f32.mrb[4].mxu0 }
 0x248   :  { %v244_v40 = vadd.f32 %v243_v39, %v180_v38  ;;  %v384_v41 = vpop.f32.mrb[5].mxu0 }
 0x249   :  { %v246_v42 = vpop.f32.mrb[6].mxu0 }
 0x24a   :  { %v249_v43 = vpack.c.bf16 %v244_v40, %v244_v40  ;;  %v385_v44 = vpop.f32.mrb[7].mxu0 }
 0x24c   :  { %391 = vmatmul.mubr.msk.bf16.vlgmr.msra.gmra.mrb[4].mxu1 %vm126_vm1, %v249_v43 }
 0x31f   :  { %v303_v47 = vpop.f32.mrb[4].mxu1 }
 0x320   :  { %v304_v48 = vadd.f32 %v303_v47, %v253_v46  ;;  %v392_v49 = vpop.f32.mrb[5].mxu1 }
 0x321   :  { %v306_v50 = vpop.f32.mrb[6].mxu1 }
 0x322   :  { %v309_v51 = vsub.f32 0.0, %v304_v48  ;;  %v393_v52 = vpop.f32.mrb[7].mxu1 }
 0x324   :  { %v310_v53 = vmul.f32 1.442695, %v309_v51 }
 0x326   :  { %410 = vpow2.f32 %v310_v53 }
 0x330   :  { %v411_v54 = vpop.eup %410 }
 0x331   :  { %v312_v55 = vadd.f32 1.0, %v411_v54 }
 0x333   :  { %412 = vrcp.f32 %v312_v55 }
 0x33d   :  { %v413_v56 = vpop.eup %412 }
 0x33e   :  { %vm321_vm6 = vcmp.lt.f32.partialorder %v319_v57, %v413_v56 }
 0x33f   :  { %v346_v58 = vsel %vm321_vm6, 1.0, %v442_v1 }
 0x340   :  { %v325_v59 = vsel %vm324_vm5, %v346_v58, %v304_v48 }
 0x341   :  { %326 = vst [vmem:[%s522_s4] sm:$0xff] %v325_v59 }
 0x342   :  { %331 = vsyncpa [#allocation3], 1 }

</bundles_post_ra>
